<compile_context>
chip_gen: v7x
topology: tpu7x:2x2x1
jax: 0.10.0
libtpu: 0.0.40
codegen_flags: <defaults>
</compile_context>

<pallas_src>
import math

import jax
import jax.numpy as jnp
from jax.experimental import pallas as pl
from jax.experimental.pallas import tpu as pltpu


# -----------------------------------------------------------------------------
# Kernel
# -----------------------------------------------------------------------------
def _denorm_kernel(x_ref, scale_ref, shift_ref, o_ref):
    # Elementwise affine; the (1, L) params broadcast over the (tm, L) tile.
    x = x_ref[...].astype(jnp.float32)
    o_ref[...] = (x * scale_ref[...] + shift_ref[...]).astype(o_ref.dtype)


# -----------------------------------------------------------------------------
# Block sizing / pallas_call wrapper
# -----------------------------------------------------------------------------
def _pick_row_block(rows, row_bytes, itemsize, target_bytes=8 << 20, min_steps=2):
    """Sublane-aligned row block moving ~target_bytes per grid step.

    Tensors above ~1 MiB are forced onto a grid of >= `min_steps` steps so the
    "parallel" grid axis can be split across both TensorCores on v7x.
    """
    sub = max(8, 32 // max(itemsize, 1))      # 8 rows f32, 16 bf16, 32 int8
    total_bytes = rows * row_bytes
    if rows <= sub or total_bytes <= (1 << 20):
        return rows                            # tiny: one full-extent block
    tm = max(sub, (target_bytes // max(row_bytes, 1)) // sub * sub)
    # Cap tm so the grid has at least `min_steps` steps (v7x megacore).
    cap = max(sub, ((rows + min_steps - 1) // min_steps) // sub * sub)
    return min(tm, cap)


def _affine_pallas_call(x2d, scale_row, shift_row, tm):
    rows, lanes = x2d.shape
    itemsize = jnp.dtype(x2d.dtype).itemsize
    block_bytes = tm * lanes * itemsize
    # Double-buffered x-in + out blocks + resident params + headroom; capped at
    # 48 MiB so it always fits v7x's 64 MiB physical VMEM with room to spare.
    vmem_limit = int(min(48 << 20,
                         max(32 << 20, 4 * block_bytes + 8 * lanes + (4 << 20))))
    return pl.pallas_call(
        _denorm_kernel,
        out_shape=jax.ShapeDtypeStruct((rows, lanes), x2d.dtype),
        grid_spec=pltpu.PrefetchScalarGridSpec(
            num_scalar_prefetch=0,
            grid=(pl.cdiv(rows, tm),),
            in_specs=[
                pl.BlockSpec((tm, lanes), lambda i: (i, 0)),
                # Constant index maps: params fetched once, VMEM-resident
                # across the whole grid (no per-step re-DMA).
                pl.BlockSpec((1, lanes), lambda i: (0, 0)),
                pl.BlockSpec((1, lanes), lambda i: (0, 0)),
            ],
            out_specs=pl.BlockSpec((tm, lanes), lambda i: (i, 0)),
        ),
        compiler_params=pltpu.CompilerParams(
            dimension_semantics=("parallel",),
            vmem_limit_bytes=vmem_limit,
        ),
    )(x2d, scale_row, shift_row)


def _run_lane_dense(flat, rows, L, scale_f32, shift_f32,
                    target_block_bytes, min_steps):
    """Run the kernel on a (rows, L) view of `flat` (L must be a multiple of F)."""
    itemsize = jnp.dtype(flat.dtype).itemsize
    x2d = flat.reshape(rows, L)
    reps = L // scale_f32.shape[0]
    scale_row = jnp.tile(scale_f32, reps).reshape(1, L)   # constant-folds under jit
    shift_row = jnp.tile(shift_f32, reps).reshape(1, L)
    tm = _pick_row_block(rows, L * itemsize, itemsize, target_block_bytes, min_steps)
    return _affine_pallas_call(x2d, scale_row, shift_row, tm)


def _divisor_lane_width(M, F, lo=128, hi=8192):
    """Most lane-efficient L = F*k with k | M and lo <= L <= hi (None if absent)."""
    best, best_score = None, -1.0
    k = 1
    while k * k <= M:
        if M % k == 0:
            for kk in (k, M // k):
                L = F * kk
                if lo <= L <= hi:
                    util = L / (128.0 * math.ceil(L / 128.0))  # lane utilization
                    score = util + min(L, 2048) * 1e-7         # util first, then size
                    if score > best_score:
                        best_score, best = score, L
        k += 1
    return best


# -----------------------------------------------------------------------------
# Public entry point
# -----------------------------------------------------------------------------
def denormalize(arr, scale, shift, *, target_lanes=1024,
                target_block_bytes=8 << 20, min_grid_steps=2):
    """arr: (..., F) array; scale/shift: (F,) per-feature affine params."""
    orig_shape = arr.shape
    F = orig_shape[-1]
    N = arr.size
    scale_f32 = jnp.asarray(scale, jnp.float32)
    shift_f32 = jnp.asarray(shift, jnp.float32)

    base = math.lcm(F, 128)
    flat = arr.reshape(-1)

    # ---- Tiny inputs: single full-extent (M, F) block; perf irrelevant. ----
    if N < base:
        out2d = _run_lane_dense(flat, N // F, F, scale_f32, shift_f32,
                                target_block_bytes, min_grid_steps)
        return out2d.reshape(orig_shape)

    # ---- Path A: exact lane-dense view; L multiple of both F and 128. ----
    if N % base == 0:
        L = base
        while L * 2 <= target_lanes and N % (L * 2) == 0:
            L *= 2
        out2d = _run_lane_dense(flat, N // L, L, scale_f32, shift_f32,
                                target_block_bytes, min_grid_steps)
        return out2d.reshape(orig_shape)

    # ---- Path B: divisor L of N (multiple of F, 128 <= L <= 8192). ----
    L = _divisor_lane_width(N // F, F)
    if L is not None:
        out2d = _run_lane_dense(flat, N // L, L, scale_f32, shift_f32,
                                target_block_bytes, min_grid_steps)
        return out2d.reshape(orig_shape)

    # ---- Path C: lane-dense main slab + tiny (<L element) jnp remainder. ----
    L = base
    while L * 2 <= target_lanes and N >= 8 * (L * 2):
        L *= 2
    rows = N // L
    n_main = rows * L                      # multiple of L, hence of F
    out_main = _run_lane_dense(flat[:n_main], rows, L, scale_f32, shift_f32,
                               target_block_bytes, min_grid_steps)
    x_rem = flat[n_main:].reshape(-1, F).astype(jnp.float32)
    out_rem = (x_rem * scale_f32 + shift_f32).astype(arr.dtype).reshape(-1)
    # TODO(synk): the concatenate re-copies the main slab (~1 extra HBM pass in
    # the worst case); still far cheaper than a feature-minor (tm, F) layout.
    out_flat = jnp.concatenate([out_main.reshape(-1), out_rem])
    return out_flat.reshape(orig_shape)


# -----------------------------------------------------------------------------
# Module-equivalent parameter builder + reference
# -----------------------------------------------------------------------------
def build_affine_params(num_feats, feat_cols, stat, norm_type="zscore",
                        dtype=jnp.float32):
    """Per-feature (scale, shift) vectors; identity for untouched columns.

    stat: dict mapping 'mean'/'std'/'min'/'max' -> length-num_feats arrays
          (stands in for the pd.DataFrame of the PyTorch module).
    """
    scale = jnp.ones((num_feats,), dtype)
    shift = jnp.zeros((num_feats,), dtype)
    for c in feat_cols:
        if norm_type == "zscore":
            scale = scale.at[c].set(stat["std"][c])
            shift = shift.at[c].set(stat["mean"][c])
        elif norm_type == "minmax":
            scale = scale.at[c].set(stat["max"][c] - stat["min"][c])
            shift = shift.at[c].set(stat["min"][c])
        else:
            raise NotImplementedError(norm_type)
    return scale, shift


def _reference(x, scale, shift, feat_cols):
    ref = x
    for c in feat_cols:
        ref = ref.at[..., c].set(
            (x[..., c].astype(jnp.float32) * scale[c] + shift[c]).astype(x.dtype))
    return ref


if __name__ == "__main__":
    key = jax.random.PRNGKey(0)
    F = 4
    feat_names = ["x", "y"]                 # denormalize features 0 and 1
    feat_cols = [0, 1]
    norm_type = "zscore"

    # Deterministic synthetic "statistics table" (replaces the pd.DataFrame).
    stat = {
        "mean": jnp.array([1.5, -2.0, 0.0, 0.0], jnp.float32),
        "std":  jnp.array([3.0,  0.5, 1.0, 1.0], jnp.float32),
        "min":  jnp.array([-1.0, 0.0, 0.0, 0.0], jnp.float32),
        "max":  jnp.array([2.0,  4.0, 1.0, 1.0], jnp.float32),
    }
    scale, shift = build_affine_params(F, feat_cols, stat, norm_type)

    cases = {
        "tiny_full_extent":    (2, 8, F),      # N < lcm(F,128): (M,F) single block
        "lane_dense_exact":    (2, 64, F),     # N % lcm(F,128) == 0 (Path A)
        "lane_dense_divisor":  (3, 50, F),     # divisor lane width L=600 (Path B)
        "main_plus_remainder": (1, 2053, F),   # prime inner dim: slab + jnp tail (Path C)
        "multi_block_grid":    (2, 49152, F),  # >1 MiB: >=2 grid steps (megacore)
    }
    keys = jax.random.split(key, len(cases))
    for (name, shp), k in zip(cases.items(), keys):
        x = jax.random.normal(k, shp, jnp.float32)
        out = jax.block_until_ready(denormalize(x, scale, shift))
        ref = _reference(x, scale, shift, feat_cols)
        assert out.shape == x.shape and out.dtype == x.dtype, name
        assert jnp.allclose(out, ref, atol=1e-5, rtol=1e-5), name

    print("KERNEL_OK")
</pallas_src>

<mosaic_0001>
module attributes {stable_mosaic.version = 11 : i64} {
  func.func @_denorm_kernel(%arg0: i32, %arg1: memref<16x4xf32, #tpu.memory_space<vmem>>, %arg2: memref<1x4xf32, #tpu.memory_space<vmem>>, %arg3: memref<1x4xf32, #tpu.memory_space<vmem>>, %arg4: memref<16x4xf32, #tpu.memory_space<vmem>>) attributes {dimension_semantics = [#tpu.dimension_semantics<parallel>], iteration_bounds = array<i64: 1>, scalar_prefetch = 0 : i64, scratch_operands = 0 : i64, tpu.core_type = #tpu.core_type<tc>, window_params = [{transform_indices = @transform_0, window_bounds = array<i64: 16, 4>}, {pipeline_mode = #tpu.pipeline_mode<synchronous>, transform_indices = @transform_1, window_bounds = array<i64: 1, 4>}, {pipeline_mode = #tpu.pipeline_mode<synchronous>, transform_indices = @transform_2, window_bounds = array<i64: 1, 4>}, {transform_indices = @transform_3, window_bounds = array<i64: 16, 4>}]} {
    %c0 = arith.constant 0 : index
    %c0_0 = arith.constant 0 : index
    %0 = vector.load %arg1[%c0, %c0_0] : memref<16x4xf32, #tpu.memory_space<vmem>>, vector<16x4xf32>
    %c0_1 = arith.constant 0 : index
    %c0_2 = arith.constant 0 : index
    %1 = vector.load %arg2[%c0_1, %c0_2] : memref<1x4xf32, #tpu.memory_space<vmem>>, vector<1x4xf32>
    %2 = vector.broadcast %1 : vector<1x4xf32> to vector<16x4xf32>
    %3 = arith.mulf %0, %2 : vector<16x4xf32>
    %c0_3 = arith.constant 0 : index
    %c0_4 = arith.constant 0 : index
    %4 = vector.load %arg3[%c0_3, %c0_4] : memref<1x4xf32, #tpu.memory_space<vmem>>, vector<1x4xf32>
    %5 = vector.broadcast %4 : vector<1x4xf32> to vector<16x4xf32>
    %6 = arith.addf %3, %5 : vector<16x4xf32>
    %c0_5 = arith.constant 0 : index
    %c0_6 = arith.constant 0 : index
    %7 = vector.load %arg4[%c0_5, %c0_6] : memref<16x4xf32, #tpu.memory_space<vmem>>, vector<16x4xf32>
    tpu.vector_store %arg4[%c0_5, %c0_6], %6 {strides = array<i32>} : memref<16x4xf32, #tpu.memory_space<vmem>>, vector<16x4xf32>,
    return
  }
  func.func @transform_0(%arg0: i32) -> (i32, i32) {
    %c0_i32 = arith.constant 0 : i32
    %c0_i32_0 = arith.constant 0 : i32
    return %arg0, %c0_i32 : i32, i32
  }
  func.func @transform_1(%arg0: i32) -> (i32, i32) {
    %c0_i32 = arith.constant 0 : i32
    %c0_i32_0 = arith.constant 0 : i32
    %c0_i32_1 = arith.constant 0 : i32
    return %c0_i32, %c0_i32_0 : i32, i32
  }
  func.func @transform_2(%arg0: i32) -> (i32, i32) {
    %c0_i32 = arith.constant 0 : i32
    %c0_i32_0 = arith.constant 0 : i32
    %c0_i32_1 = arith.constant 0 : i32
    return %c0_i32, %c0_i32_0 : i32, i32
  }
  func.func @transform_3(%arg0: i32) -> (i32, i32) {
    %c0_i32 = arith.constant 0 : i32
    %c0_i32_0 = arith.constant 0 : i32
    return %arg0, %c0_i32 : i32, i32
  }
}

</mosaic_0001>

<bundles_post_ra>
// kernel: tpu_custom_call.1
= control target key start
LH: loop header
LB: loop body
LE: loop exit
PB: predicated region body
PF: predicated region fallthrough
CT: control target
= control target key end

     0   :  { %vm34_vm0 = vcmask 31744   ;;  %s81_s0 = inlined_call_operand.vmem [shape: f32[16,4], index: 0, kind: input, shape index: {}]   ;;  %s82_s1 = inlined_call_operand.vmem [shape: f32[1,4], index: 1, kind: input, shape index: {}]   ;;  %s83_s2 = inlined_call_operand.vmem [shape: f32[1,4], index: 2, kind: input, shape index: {}]   ;;  %s84_s3 = inlined_call_operand.vmem [shape: f32[16,4], index: 3, kind: output, shape index: {}]  }
   0x1   :  { %v14_v0 = vld [vmem:[%s81_s0] sm:$0xff]  ;;  %v15_v4 = vld [vmem:[%s81_s0 + $0x8] sm:$0xff] }
   0x2   :  { %v41_v1 = vld [vmem:[%s82_s1] ss:$0 sm:$0xff] }
   0x3   :  { %v42_v2 = vld [vmem:[%s83_s2] ss:$0 sm:$0xff]  ;;  %v23_v3 = vmul.f32 %v41_v1, %v14_v0  ;;  %v24_v5 = vmul.f32 %v41_v1, %v15_v4 }
   0x5   :  { %v32_v6 = vadd.f32 %v42_v2, %v23_v3  ;;  %v33_v7 = vadd.f32 %v42_v2, %v24_v5 }
   0x7   :  { %35 = vst.msk [vmem:[%s84_s3] sm:$0xff] %vm34_vm0, %v32_v6  ;;  %36 = vst.msk [vmem:[%s84_s3 + $0x8] sm:$0xff] %vm34_vm0, %v33_v7 }

</bundles_post_ra>
